<compile_context>
chip_gen: v7x
topology: tpu7x:2x2x1
jax: 0.10.0
libtpu: 0.0.40
codegen_flags: <defaults>
</compile_context>

<pallas_src>
import functools

import jax
import jax.numpy as jnp
from jax.experimental import pallas as pl
from jax.experimental.pallas import tpu as pltpu


def _round_up(x, m):
    return (x + m - 1) // m * m


def _pick_tile(n):
    """Row/col tile size for the N x N adjacency (square tile, lane aligned)."""
    if n <= 512:
        return _round_up(max(n, 8), 128)
    return 512


def _sage_layer_kernel(a_ref, xk_ref, xi_ref, wl_ref, wr_ref, b_ref,
                       o_ref, acc_ref):
    """One fused SAGEConv layer + ReLU.

    Grid: (row tiles i, adjacency-column tiles k); k is the reduction axis.

    a_ref   : [tm, tk]           bf16  row-normalized adjacency tile A[i, k]
    xk_ref  : [tk, Fin_pad]      bf16  X rows feeding the aggregation (block k)
    xi_ref  : [tm, Fin_pad]      bf16  X rows of this output tile (self term)
    wl_ref  : [Fin_pad, H_pad]   bf16  neighbor projection W_l
    wr_ref  : [Fin_pad, H_pad]   bf16  self projection W_r
    b_ref   : [1, H_pad]         f32   bias
    o_ref   : [tm, H_pad]        out   output tile (written at last k)
    acc_ref : [tm, Fin_pad]      f32   aggregation accumulator (scratch)
    """
    k = pl.program_id(1)

    @pl.when(k == 0)
    def _():
        acc_ref[...] = jnp.zeros_like(acc_ref)

    # agg[i] += A[i, k] @ X[k]   (MXU, bf16 in / f32 accumulate)
    acc_ref[...] += jnp.dot(
        a_ref[...], xk_ref[...], preferred_element_type=jnp.float32
    )

    @pl.when(k == pl.num_programs(1) - 1)
    def _():
        agg = acc_ref[...].astype(jnp.bfloat16)
        out = jnp.dot(agg, wl_ref[...], preferred_element_type=jnp.float32)
        out = out + jnp.dot(
            xi_ref[...], wr_ref[...], preferred_element_type=jnp.float32)
        out = out + b_ref[...]
        # ReLU is applied after every SAGEConv in the reference forward.
        o_ref[...] = jnp.maximum(out, 0.0).astype(o_ref.dtype)


def sage_layer(a_bf16, x_bf16, w_l, w_r, b, *, tile, out_dtype):
    """One fused SAGEConv + ReLU layer on padded, lane-dense operands."""
    n_pad = a_bf16.shape[0]
    fin_pad = x_bf16.shape[1]
    h_pad = w_l.shape[1]
    grid = (n_pad // tile, n_pad // tile)

    out_bytes = 2 if out_dtype == jnp.bfloat16 else 4
    cost = pl.CostEstimate(
        flops=2 * n_pad * n_pad * fin_pad + 4 * n_pad * fin_pad * h_pad,
        transcendentals=0,
        bytes_accessed=(
            a_bf16.size * 2            # adjacency (bf16)
            + 2 * x_bf16.size * 2      # X read for aggregation + self term
            + (w_l.size + w_r.size) * 2
            + b.size * 4
            + n_pad * h_pad * out_bytes
        ),
    )

    return pl.pallas_call(
        _sage_layer_kernel,
        out_shape=jax.ShapeDtypeStruct((n_pad, h_pad), out_dtype),
        grid_spec=pltpu.PrefetchScalarGridSpec(
            num_scalar_prefetch=0,
            grid=grid,
            in_specs=[
                pl.BlockSpec((tile, tile), lambda i, k: (i, k)),      # A tile
                pl.BlockSpec((tile, fin_pad), lambda i, k: (k, 0)),   # X (agg)
                pl.BlockSpec((tile, fin_pad), lambda i, k: (i, 0)),   # X (self)
                pl.BlockSpec((fin_pad, h_pad), lambda i, k: (0, 0)),  # W_l
                pl.BlockSpec((fin_pad, h_pad), lambda i, k: (0, 0)),  # W_r
                pl.BlockSpec((1, h_pad), lambda i, k: (0, 0)),        # bias
            ],
            out_specs=pl.BlockSpec((tile, h_pad), lambda i, k: (i, 0)),
            scratch_shapes=[pltpu.VMEM((tile, fin_pad), jnp.float32)],
        ),
        compiler_params=pltpu.CompilerParams(
            # Row tiles shard across TensorCores (v7x megacore); the reduction
            # axis (last) is sequential with a resident accumulator.
            dimension_semantics=("parallel", "arbitrary"),
            vmem_limit_bytes=48 * 1024 * 1024,
        ),
        cost_estimate=cost,
    )(a_bf16, x_bf16, x_bf16, w_l, w_r, b)


def build_normalized_adjacency(edge_index, num_nodes):
    """Dense row-normalized adjacency: A[i, j] = (#edges j->i) / deg_in(i)."""
    # TODO(synk): for genuinely sparse / very large graphs replace this dense
    # A@X path with a scalar-prefetch neighbor-gather aggregation kernel.
    src = edge_index[0]
    dst = edge_index[1]
    adj = jnp.zeros((num_nodes, num_nodes), jnp.float32)
    adj = adj.at[dst, src].add(1.0)
    deg = jnp.sum(adj, axis=1, keepdims=True)
    return adj / jnp.maximum(deg, 1.0)


@functools.partial(jax.jit, static_argnames=("out_dim",))
def graphsage_forward(x, edge_index, params, out_dim):
    """Jitted multi-layer forward. Builds A_norm once (bf16) and reuses it."""
    n, fin = x.shape
    tile = _pick_tile(n)
    n_pad = _round_up(n, tile)
    fin_pad = _round_up(fin, 128)

    a = build_normalized_adjacency(edge_index, n)
    a_bf16 = (
        jnp.zeros((n_pad, n_pad), jnp.float32).at[:n, :n].set(a)
    ).astype(jnp.bfloat16)

    h = jnp.zeros((n_pad, fin_pad), jnp.bfloat16).at[:n, :fin].set(
        x.astype(jnp.bfloat16))
    num_layers = len(params)
    for li, (w_l, w_r, b) in enumerate(params):
        last = li == num_layers - 1
        # TODO(synk): when Fin_pad > H_pad, compute A@(X@W_l) instead of
        # (A@X)@W_l to shrink the dominant N^2 term; padded dims are equal
        # here so it is a no-op.
        h = sage_layer(
            a_bf16, h, w_l, w_r, b, tile=tile,
            out_dtype=jnp.float32 if last else jnp.bfloat16)
        # TODO(synk): F.dropout(training=True) not implemented; the reference
        # forward in eval mode makes dropout an identity op.
    return h[:n, :out_dim]


class GraphSAGEPallas:
    """Mirror of the PyTorch GraphSAGE module (inference forward)."""

    def __init__(self, in_channels, hidden_channels, num_layers, dropout, key):
        self.num_layers = num_layers
        self.hidden_channels = hidden_channels
        self.dropout = dropout  # identity in inference
        h_pad = _round_up(hidden_channels, 128)

        params = []
        ref_params = []
        fan_in = in_channels
        for _ in range(num_layers):
            key, k1, k2, k3 = jax.random.split(key, 4)
            scale = 1.0 / jnp.sqrt(jnp.float32(fan_in))
            w_l = jax.random.uniform(
                k1, (fan_in, hidden_channels), jnp.float32, -scale, scale)
            w_r = jax.random.uniform(
                k2, (fan_in, hidden_channels), jnp.float32, -scale, scale)
            b = jax.random.uniform(
                k3, (1, hidden_channels), jnp.float32, -scale, scale)
            ref_params.append((w_l, w_r, b))

            # Zero-pad to lane width; bf16 for the MXU.
            fin_pad = _round_up(fan_in, 128)
            w_l_pad = jnp.zeros((fin_pad, h_pad), jnp.float32)
            w_l_pad = w_l_pad.at[:fan_in, :hidden_channels].set(w_l)
            w_r_pad = jnp.zeros((fin_pad, h_pad), jnp.float32)
            w_r_pad = w_r_pad.at[:fan_in, :hidden_channels].set(w_r)
            b_pad = jnp.zeros((1, h_pad), jnp.float32)
            b_pad = b_pad.at[:, :hidden_channels].set(b)

            params.append((w_l_pad.astype(jnp.bfloat16),
                           w_r_pad.astype(jnp.bfloat16),
                           b_pad))
            fan_in = hidden_channels

        self.params = tuple(params)
        self.ref_params = tuple(ref_params)

    def __call__(self, x, edge_index):
        return graphsage_forward(
            x, edge_index, self.params, out_dim=self.hidden_channels)

    def reference_forward(self, x, edge_index):
        """Pure-JAX f32 reference (no padding, no bf16) for validation."""
        n = x.shape[0]
        a = build_normalized_adjacency(edge_index, n)
        h = x
        for w_l, w_r, b in self.ref_params:
            agg = a @ h
            h = jnp.maximum(agg @ w_l + h @ w_r + b, 0.0)
        return h


if __name__ == "__main__":
    key = jax.random.PRNGKey(0)

    num_nodes = 128
    in_channels = 32
    hidden_channels = 64
    num_layers = 2
    dropout = 0.5
    num_edges = 512

    key, kx, ke_src, ke_dst, kparams = jax.random.split(key, 5)
    x = jax.random.normal(kx, (num_nodes, in_channels), jnp.float32)
    src = jax.random.randint(ke_src, (num_edges,), 0, num_nodes, jnp.int32)
    dst = jax.random.randint(ke_dst, (num_edges,), 0, num_nodes, jnp.int32)
    edge_index = jnp.stack([src, dst], axis=0)  # [2, E]

    model = GraphSAGEPallas(in_channels, hidden_channels, num_layers,
                            dropout, kparams)

    out = jax.block_until_ready(model(x, edge_index))
    assert out.shape == (num_nodes, hidden_channels)
    assert bool(jnp.all(out >= 0.0))  # ReLU applied

    # Validate against the pure-JAX f32 reference (bf16 operands -> relaxed tol).
    ref = jax.block_until_ready(model.reference_forward(x, edge_index))
    err = jnp.max(jnp.abs(out - ref)) / (jnp.max(jnp.abs(ref)) + 1e-6)
    assert float(err) < 1e-1, f"mismatch vs reference: rel err {float(err)}"

    print("KERNEL_OK")
</pallas_src>

<mosaic_0001>
module attributes {stable_mosaic.version = 11 : i64} {
  func.func private @main(%arg0: i32) attributes {dimension_semantics = [#tpu.dimension_semantics<core_parallel>], iteration_bounds = array<i64: 2>, tpu.core_type = #tpu.core_type<sc_scalar_subcore>, window_params = []} {
    return
  }
}

module attributes {stable_mosaic.version = 11 : i64} {
  func.func private @main(%arg0: i32) attributes {dimension_semantics = [#tpu.dimension_semantics<core_parallel>], iteration_bounds = array<i64: 2>, tpu.core_type = #tpu.core_type<sc_scalar_subcore>, window_params = []} {
    return
  }
}

module attributes {stable_mosaic.version = 11 : i64} {
  func.func @_sage_layer_kernel(%arg0: i32, %arg1: i32, %arg2: memref<128x128xbf16, #tpu.memory_space<vmem>>, %arg3: memref<128x128xbf16, #tpu.memory_space<vmem>>, %arg4: memref<128x128xbf16, #tpu.memory_space<vmem>>, %arg5: memref<128x128xbf16, #tpu.memory_space<vmem>>, %arg6: memref<128x128xbf16, #tpu.memory_space<vmem>>, %arg7: memref<1x128xf32, #tpu.memory_space<vmem>>, %arg8: memref<128x128xbf16, #tpu.memory_space<vmem>>, %arg9: memref<128x128xf32, #tpu.memory_space<vmem>>) attributes {dimension_semantics = [#tpu.dimension_semantics<parallel>, #tpu.dimension_semantics<arbitrary>], iteration_bounds = array<i64: 1, 1>, scalar_prefetch = 0 : i64, scratch_operands = 1 : i64, tpu.core_type = #tpu.core_type<tc>, window_params = [{transform_indices = @transform_0, window_bounds = array<i64: 128, 128>}, {transform_indices = @transform_1, window_bounds = array<i64: 128, 128>}, {transform_indices = @transform_2, window_bounds = array<i64: 128, 128>}, {pipeline_mode = #tpu.pipeline_mode<synchronous>, transform_indices = @transform_3, window_bounds = array<i64: 128, 128>}, {pipeline_mode = #tpu.pipeline_mode<synchronous>, transform_indices = @transform_4, window_bounds = array<i64: 128, 128>}, {pipeline_mode = #tpu.pipeline_mode<synchronous>, transform_indices = @transform_5, window_bounds = array<i64: 1, 128>}, {transform_indices = @transform_6, window_bounds = array<i64: 128, 128>}]} {
    %c0_i32 = arith.constant 0 : i32
    %0 = arith.cmpi eq, %arg1, %c0_i32 : i32
    %1 = arith.extui %0 : i1 to i32
    %c0_i32_0 = arith.constant 0 : i32
    %2 = arith.cmpi ne, %1, %c0_i32_0 : i32
    scf.if %2 {
      %cst_10 = arith.constant 0.000000e+00 : f32
      %12 = vector.broadcast %cst_10 : f32 to vector<128x128xf32>
      %c0_11 = arith.constant 0 : index
      %c0_12 = arith.constant 0 : index
      %13 = vector.load %arg9[%c0_11, %c0_12] : memref<128x128xf32, #tpu.memory_space<vmem>>, vector<128x128xf32>
      tpu.vector_store %arg9[%c0_11, %c0_12], %12 {strides = array<i32>} : memref<128x128xf32, #tpu.memory_space<vmem>>, vector<128x128xf32>,
    } else {
    }
    %c0 = arith.constant 0 : index
    %c0_1 = arith.constant 0 : index
    %3 = vector.load %arg9[%c0, %c0_1] : memref<128x128xf32, #tpu.memory_space<vmem>>, vector<128x128xf32>
    %c0_2 = arith.constant 0 : index
    %c0_3 = arith.constant 0 : index
    %4 = vector.load %arg2[%c0_2, %c0_3] : memref<128x128xbf16, #tpu.memory_space<vmem>>, vector<128x128xbf16>
    %c0_4 = arith.constant 0 : index
    %c0_5 = arith.constant 0 : index
    %5 = vector.load %arg3[%c0_4, %c0_5] : memref<128x128xbf16, #tpu.memory_space<vmem>>, vector<128x128xbf16>
    %cst = arith.constant dense<0.000000e+00> : vector<128x128xf32>
    %6 = tpu.matmul %4, %5, %cst {dimension_numbers = #tpu.dot_dimension_numbers<[1], [0], [0], [1], [0, 0, 1, 1], [], []>} : vector<128x128xbf16>, vector<128x128xbf16>, vector<128x128xf32> -> vector<128x128xf32>
    %7 = arith.addf %3, %6 : vector<128x128xf32>
    %c0_6 = arith.constant 0 : index
    %c0_7 = arith.constant 0 : index
    %8 = vector.load %arg9[%c0_6, %c0_7] : memref<128x128xf32, #tpu.memory_space<vmem>>, vector<128x128xf32>
    tpu.vector_store %arg9[%c0_6, %c0_7], %7 {strides = array<i32>} : memref<128x128xf32, #tpu.memory_space<vmem>>, vector<128x128xf32>,
    %c0_i32_8 = arith.constant 0 : i32
    %9 = arith.cmpi eq, %arg1, %c0_i32_8 : i32
    %10 = arith.extui %9 : i1 to i32
    %c0_i32_9 = arith.constant 0 : i32
    %11 = arith.cmpi ne, %10, %c0_i32_9 : i32
    scf.if %11 {
      %c0_10 = arith.constant 0 : index
      %c0_11 = arith.constant 0 : index
      %12 = vector.load %arg9[%c0_10, %c0_11] : memref<128x128xf32, #tpu.memory_space<vmem>>, vector<128x128xf32>
      %13 = arith.truncf %12 : vector<128x128xf32> to vector<128x128xbf16>
      %c0_12 = arith.constant 0 : index
      %c0_13 = arith.constant 0 : index
      %14 = vector.load %arg5[%c0_12, %c0_13] : memref<128x128xbf16, #tpu.memory_space<vmem>>, vector<128x128xbf16>
      %cst_14 = arith.constant dense<0.000000e+00> : vector<128x128xf32>
      %15 = tpu.matmul %13, %14, %cst_14 {dimension_numbers = #tpu.dot_dimension_numbers<[1], [0], [0], [1], [0, 0, 1, 1], [], []>} : vector<128x128xbf16>, vector<128x128xbf16>, vector<128x128xf32> -> vector<128x128xf32>
      %c0_15 = arith.constant 0 : index
      %c0_16 = arith.constant 0 : index
      %16 = vector.load %arg4[%c0_15, %c0_16] : memref<128x128xbf16, #tpu.memory_space<vmem>>, vector<128x128xbf16>
      %c0_17 = arith.constant 0 : index
      %c0_18 = arith.constant 0 : index
      %17 = vector.load %arg6[%c0_17, %c0_18] : memref<128x128xbf16, #tpu.memory_space<vmem>>, vector<128x128xbf16>
      %cst_19 = arith.constant dense<0.000000e+00> : vector<128x128xf32>
      %18 = tpu.matmul %16, %17, %cst_19 {dimension_numbers = #tpu.dot_dimension_numbers<[1], [0], [0], [1], [0, 0, 1, 1], [], []>} : vector<128x128xbf16>, vector<128x128xbf16>, vector<128x128xf32> -> vector<128x128xf32>
      %19 = arith.addf %15, %18 : vector<128x128xf32>
      %c0_20 = arith.constant 0 : index
      %c0_21 = arith.constant 0 : index
      %20 = vector.load %arg7[%c0_20, %c0_21] : memref<1x128xf32, #tpu.memory_space<vmem>>, vector<1x128xf32>
      %21 = vector.broadcast %20 : vector<1x128xf32> to vector<128x128xf32>
      %22 = arith.addf %19, %21 : vector<128x128xf32>
      %cst_22 = arith.constant 0.000000e+00 : f32
      %23 = vector.broadcast %cst_22 : f32 to vector<128x128xf32>
      %24 = arith.maximumf %22, %23 : vector<128x128xf32>
      %25 = arith.truncf %24 : vector<128x128xf32> to vector<128x128xbf16>
      %c0_23 = arith.constant 0 : index
      %c0_24 = arith.constant 0 : index
      %26 = vector.load %arg8[%c0_23, %c0_24] : memref<128x128xbf16, #tpu.memory_space<vmem>>, vector<128x128xbf16>
      tpu.vector_store %arg8[%c0_23, %c0_24], %25 {strides = array<i32>} : memref<128x128xbf16, #tpu.memory_space<vmem>>, vector<128x128xbf16>,
    } else {
    }
    return
  }
  func.func @transform_0(%arg0: i32, %arg1: i32) -> (i32, i32) {
    %c0_i32 = arith.constant 0 : i32
    return %arg0, %arg1 : i32, i32
  }
  func.func @transform_1(%arg0: i32, %arg1: i32) -> (i32, i32) {
    %c0_i32 = arith.constant 0 : i32
    %c0_i32_0 = arith.constant 0 : i32
    return %arg1, %c0_i32 : i32, i32
  }
  func.func @transform_2(%arg0: i32, %arg1: i32) -> (i32, i32) {
    %c0_i32 = arith.constant 0 : i32
    %c0_i32_0 = arith.constant 0 : i32
    return %arg0, %c0_i32 : i32, i32
  }
  func.func @transform_3(%arg0: i32, %arg1: i32) -> (i32, i32) {
    %c0_i32 = arith.constant 0 : i32
    %c0_i32_0 = arith.constant 0 : i32
    %c0_i32_1 = arith.constant 0 : i32
    return %c0_i32, %c0_i32_0 : i32, i32
  }
  func.func @transform_4(%arg0: i32, %arg1: i32) -> (i32, i32) {
    %c0_i32 = arith.constant 0 : i32
    %c0_i32_0 = arith.constant 0 : i32
    %c0_i32_1 = arith.constant 0 : i32
    return %c0_i32, %c0_i32_0 : i32, i32
  }
  func.func @transform_5(%arg0: i32, %arg1: i32) -> (i32, i32) {
    %c0_i32 = arith.constant 0 : i32
    %c0_i32_0 = arith.constant 0 : i32
    %c0_i32_1 = arith.constant 0 : i32
    return %c0_i32, %c0_i32_0 : i32, i32
  }
  func.func @transform_6(%arg0: i32, %arg1: i32) -> (i32, i32) {
    %c0_i32 = arith.constant 0 : i32
    %c0_i32_0 = arith.constant 0 : i32
    return %arg0, %c0_i32 : i32, i32
  }
}

module attributes {stable_mosaic.version = 11 : i64} {
  func.func @_sage_layer_kernel(%arg0: i32, %arg1: i32, %arg2: memref<128x128xbf16, #tpu.memory_space<vmem>>, %arg3: memref<128x128xbf16, #tpu.memory_space<vmem>>, %arg4: memref<128x128xbf16, #tpu.memory_space<vmem>>, %arg5: memref<128x128xbf16, #tpu.memory_space<vmem>>, %arg6: memref<128x128xbf16, #tpu.memory_space<vmem>>, %arg7: memref<1x128xf32, #tpu.memory_space<vmem>>, %arg8: memref<128x128xf32, #tpu.memory_space<vmem>>, %arg9: memref<128x128xf32, #tpu.memory_space<vmem>>) attributes {dimension_semantics = [#tpu.dimension_semantics<parallel>, #tpu.dimension_semantics<arbitrary>], iteration_bounds = array<i64: 1, 1>, scalar_prefetch = 0 : i64, scratch_operands = 1 : i64, tpu.core_type = #tpu.core_type<tc>, window_params = [{transform_indices = @transform_0, window_bounds = array<i64: 128, 128>}, {transform_indices = @transform_1, window_bounds = array<i64: 128, 128>}, {transform_indices = @transform_2, window_bounds = array<i64: 128, 128>}, {pipeline_mode = #tpu.pipeline_mode<synchronous>, transform_indices = @transform_3, window_bounds = array<i64: 128, 128>}, {pipeline_mode = #tpu.pipeline_mode<synchronous>, transform_indices = @transform_4, window_bounds = array<i64: 128, 128>}, {pipeline_mode = #tpu.pipeline_mode<synchronous>, transform_indices = @transform_5, window_bounds = array<i64: 1, 128>}, {transform_indices = @transform_6, window_bounds = array<i64: 128, 128>}]} {
    %c0_i32 = arith.constant 0 : i32
    %0 = arith.cmpi eq, %arg1, %c0_i32 : i32
    %1 = arith.extui %0 : i1 to i32
    %c0_i32_0 = arith.constant 0 : i32
    %2 = arith.cmpi ne, %1, %c0_i32_0 : i32
    scf.if %2 {
      %cst_10 = arith.constant 0.000000e+00 : f32
      %12 = vector.broadcast %cst_10 : f32 to vector<128x128xf32>
      %c0_11 = arith.constant 0 : index
      %c0_12 = arith.constant 0 : index
      %13 = vector.load %arg9[%c0_11, %c0_12] : memref<128x128xf32, #tpu.memory_space<vmem>>, vector<128x128xf32>
      tpu.vector_store %arg9[%c0_11, %c0_12], %12 {strides = array<i32>} : memref<128x128xf32, #tpu.memory_space<vmem>>, vector<128x128xf32>,
    } else {
    }
    %c0 = arith.constant 0 : index
    %c0_1 = arith.constant 0 : index
    %3 = vector.load %arg9[%c0, %c0_1] : memref<128x128xf32, #tpu.memory_space<vmem>>, vector<128x128xf32>
    %c0_2 = arith.constant 0 : index
    %c0_3 = arith.constant 0 : index
    %4 = vector.load %arg2[%c0_2, %c0_3] : memref<128x128xbf16, #tpu.memory_space<vmem>>, vector<128x128xbf16>
    %c0_4 = arith.constant 0 : index
    %c0_5 = arith.constant 0 : index
    %5 = vector.load %arg3[%c0_4, %c0_5] : memref<128x128xbf16, #tpu.memory_space<vmem>>, vector<128x128xbf16>
    %cst = arith.constant dense<0.000000e+00> : vector<128x128xf32>
    %6 = tpu.matmul %4, %5, %cst {dimension_numbers = #tpu.dot_dimension_numbers<[1], [0], [0], [1], [0, 0, 1, 1], [], []>} : vector<128x128xbf16>, vector<128x128xbf16>, vector<128x128xf32> -> vector<128x128xf32>
    %7 = arith.addf %3, %6 : vector<128x128xf32>
    %c0_6 = arith.constant 0 : index
    %c0_7 = arith.constant 0 : index
    %8 = vector.load %arg9[%c0_6, %c0_7] : memref<128x128xf32, #tpu.memory_space<vmem>>, vector<128x128xf32>
    tpu.vector_store %arg9[%c0_6, %c0_7], %7 {strides = array<i32>} : memref<128x128xf32, #tpu.memory_space<vmem>>, vector<128x128xf32>,
    %c0_i32_8 = arith.constant 0 : i32
    %9 = arith.cmpi eq, %arg1, %c0_i32_8 : i32
    %10 = arith.extui %9 : i1 to i32
    %c0_i32_9 = arith.constant 0 : i32
    %11 = arith.cmpi ne, %10, %c0_i32_9 : i32
    scf.if %11 {
      %c0_10 = arith.constant 0 : index
      %c0_11 = arith.constant 0 : index
      %12 = vector.load %arg9[%c0_10, %c0_11] : memref<128x128xf32, #tpu.memory_space<vmem>>, vector<128x128xf32>
      %13 = arith.truncf %12 : vector<128x128xf32> to vector<128x128xbf16>
      %c0_12 = arith.constant 0 : index
      %c0_13 = arith.constant 0 : index
      %14 = vector.load %arg5[%c0_12, %c0_13] : memref<128x128xbf16, #tpu.memory_space<vmem>>, vector<128x128xbf16>
      %cst_14 = arith.constant dense<0.000000e+00> : vector<128x128xf32>
      %15 = tpu.matmul %13, %14, %cst_14 {dimension_numbers = #tpu.dot_dimension_numbers<[1], [0], [0], [1], [0, 0, 1, 1], [], []>} : vector<128x128xbf16>, vector<128x128xbf16>, vector<128x128xf32> -> vector<128x128xf32>
      %c0_15 = arith.constant 0 : index
      %c0_16 = arith.constant 0 : index
      %16 = vector.load %arg4[%c0_15, %c0_16] : memref<128x128xbf16, #tpu.memory_space<vmem>>, vector<128x128xbf16>
      %c0_17 = arith.constant 0 : index
      %c0_18 = arith.constant 0 : index
      %17 = vector.load %arg6[%c0_17, %c0_18] : memref<128x128xbf16, #tpu.memory_space<vmem>>, vector<128x128xbf16>
      %cst_19 = arith.constant dense<0.000000e+00> : vector<128x128xf32>
      %18 = tpu.matmul %16, %17, %cst_19 {dimension_numbers = #tpu.dot_dimension_numbers<[1], [0], [0], [1], [0, 0, 1, 1], [], []>} : vector<128x128xbf16>, vector<128x128xbf16>, vector<128x128xf32> -> vector<128x128xf32>
      %19 = arith.addf %15, %18 : vector<128x128xf32>
      %c0_20 = arith.constant 0 : index
      %c0_21 = arith.constant 0 : index
      %20 = vector.load %arg7[%c0_20, %c0_21] : memref<1x128xf32, #tpu.memory_space<vmem>>, vector<1x128xf32>
      %21 = vector.broadcast %20 : vector<1x128xf32> to vector<128x128xf32>
      %22 = arith.addf %19, %21 : vector<128x128xf32>
      %cst_22 = arith.constant 0.000000e+00 : f32
      %23 = vector.broadcast %cst_22 : f32 to vector<128x128xf32>
      %24 = arith.maximumf %22, %23 : vector<128x128xf32>
      %c0_23 = arith.constant 0 : index
      %c0_24 = arith.constant 0 : index
      %25 = vector.load %arg8[%c0_23, %c0_24] : memref<128x128xf32, #tpu.memory_space<vmem>>, vector<128x128xf32>
      tpu.vector_store %arg8[%c0_23, %c0_24], %24 {strides = array<i32>} : memref<128x128xf32, #tpu.memory_space<vmem>>, vector<128x128xf32>,
    } else {
    }
    return
  }
  func.func @transform_0(%arg0: i32, %arg1: i32) -> (i32, i32) {
    %c0_i32 = arith.constant 0 : i32
    return %arg0, %arg1 : i32, i32
  }
  func.func @transform_1(%arg0: i32, %arg1: i32) -> (i32, i32) {
    %c0_i32 = arith.constant 0 : i32
    %c0_i32_0 = arith.constant 0 : i32
    return %arg1, %c0_i32 : i32, i32
  }
  func.func @transform_2(%arg0: i32, %arg1: i32) -> (i32, i32) {
    %c0_i32 = arith.constant 0 : i32
    %c0_i32_0 = arith.constant 0 : i32
    return %arg0, %c0_i32 : i32, i32
  }
  func.func @transform_3(%arg0: i32, %arg1: i32) -> (i32, i32) {
    %c0_i32 = arith.constant 0 : i32
    %c0_i32_0 = arith.constant 0 : i32
    %c0_i32_1 = arith.constant 0 : i32
    return %c0_i32, %c0_i32_0 : i32, i32
  }
  func.func @transform_4(%arg0: i32, %arg1: i32) -> (i32, i32) {
    %c0_i32 = arith.constant 0 : i32
    %c0_i32_0 = arith.constant 0 : i32
    %c0_i32_1 = arith.constant 0 : i32
    return %c0_i32, %c0_i32_0 : i32, i32
  }
  func.func @transform_5(%arg0: i32, %arg1: i32) -> (i32, i32) {
    %c0_i32 = arith.constant 0 : i32
    %c0_i32_0 = arith.constant 0 : i32
    %c0_i32_1 = arith.constant 0 : i32
    return %c0_i32, %c0_i32_0 : i32, i32
  }
  func.func @transform_6(%arg0: i32, %arg1: i32) -> (i32, i32) {
    %c0_i32 = arith.constant 0 : i32
    %c0_i32_0 = arith.constant 0 : i32
    return %arg0, %c0_i32 : i32, i32
  }
}

</mosaic_0001>

<bundles_post_ra>
// kernel: graphsage_forward.3
= control target key start
LH: loop header
LB: loop body
LE: loop exit
PB: predicated region body
PF: predicated region fallthrough
CT: control target
= control target key end

     0   :  { %s1270_s1 = inlined_call_operand.vmem [shape: bf16[128,128], index: 1, kind: input, shape index: {}, may-alias: {1,2}]   ;;  %s1271_s0 = inlined_call_operand.vmem [shape: bf16[128,128], index: 0, kind: input, shape index: {}]   ;;  %s1272_s4 = inlined_call_operand.vmem [shape: bf16[128,128], index: 4, kind: input, shape index: {}]   ;;  %s1273_s3 = inlined_call_operand.vmem [shape: bf16[128,128], index: 3, kind: input, shape index: {}]   ;;  %s1274_s2 = inlined_call_operand.vmem [shape: bf16[128,128], index: 2, kind: input, shape index: {}, may-alias: {1,2}]   ;;  %s1275_s5 = inlined_call_operand.vmem [shape: f32[1,128], index: 5, kind: input, shape index: {}]   ;;  %s1276_s6 = inlined_call_operand.vmem [shape: f32[128,128], index: 6, kind: output, shape index: {}]  }
   0x1   :  { %v1006_v0 = vld [vmem:[%s1270_s1] sm:$0xff]   ;;  %v1007_v1 = vld [vmem:[%s1270_s1 + $0x8] sm:$0xff]   ;;  %v1008_v2 = vld [vmem:[%s1270_s1 + $0x10] sm:$0xff]  }
   0x2   :  { %878 = vmatprep.subr.bf16.mxu0 %v1006_v0  ;;  %v1009_v3 = vld [vmem:[%s1270_s1 + $0x18] sm:$0xff]   ;;  %v1014_v4 = vld [vmem:[%s1271_s0] sm:$0xff]   ;;  %v1011_v6 = vld [vmem:[%s1270_s1 + $0x28] sm:$0xff]  }
   0x3   :  { %879 = vmatpush3.bf16.msra.mxu0 %v1006_v0  ;;  %894 = vmatprep.mubr.bf16.mxu0 %v1014_v4  ;;  %v1010_v5 = vld [vmem:[%s1270_s1 + $0x20] sm:$0xff]   ;;  %v1023_v8 = vld [vmem:[%s1272_s4 + $0x8] sm:$0xff]   ;;  %v1012_v9 = vld [vmem:[%s1270_s1 + $0x30] sm:$0xff]  }
   0x4   :  { %880 = vmatprep.subr.bf16.mxu0 %v1007_v1  ;;  %v1022_v7 = vld [vmem:[%s1272_s4] sm:$0xff]   ;;  %v1024_v10 = vld [vmem:[%s1272_s4 + $0x10] sm:$0xff]   ;;  %v1013_v11 = vld [vmem:[%s1270_s1 + $0x38] sm:$0xff]  }
   0x5   :  { %910 = vmatprep.subr.bf16.mxu1 %v1022_v7  ;;  %v1025_v12 = vld [vmem:[%s1272_s4 + $0x18] sm:$0xff]   ;;  %v1026_v13 = vld [vmem:[%s1272_s4 + $0x20] sm:$0xff]   ;;  %v1015_v16 = vld [vmem:[%s1271_s0 + $0x8] sm:$0xff]  }
   0x6   :  { %911 = vmatpush3.bf16.msra.mxu1 %v1022_v7  ;;  %v1033_v14 = vld [vmem:[%s1274_s2] sm:$0xff]   ;;  %v1016_v17 = vld [vmem:[%s1271_s0 + $0x10] sm:$0xff]   ;;  %v1028_v18 = vld [vmem:[%s1272_s4 + $0x28] sm:$0xff]  }
   0x7   :  { %881 = vmatpush3.bf16.msra.mxu0 %v1007_v1  ;;  %912 = vmatprep.subr.bf16.mxu1 %v1023_v8  ;;  %v1027_v15 = vld [vmem:[%s1273_s3] sm:$0xff]   ;;  %v1029_v19 = vld [vmem:[%s1273_s3 + $0x8] sm:$0xff]   ;;  %v1030_v20 = vld [vmem:[%s1272_s4 + $0x30] sm:$0xff]  }
   0x8   :  { %882 = vmatprep.subr.bf16.mxu0 %v1008_v2  ;;  %926 = vmatprep.mubr.bf16.mxu1 %v1033_v14  ;;  %v1031_v21 = vld [vmem:[%s1273_s3 + $0x10] sm:$0xff]   ;;  %v1017_v22 = vld [vmem:[%s1271_s0 + $0x18] sm:$0xff]   ;;  %v1018_v23 = vld [vmem:[%s1271_s0 + $0x20] sm:$0xff]  }
   0x9   :  { %v1032_v24 = vld [vmem:[%s1272_s4 + $0x38] sm:$0xff]   ;;  %v1036_v26 = vld [vmem:[%s1273_s3 + $0x20] sm:$0xff]   ;;  %v1019_v27 = vld [vmem:[%s1271_s0 + $0x28] sm:$0xff]  }
   0xa   :  { %913 = vmatpush3.bf16.msra.mxu1 %v1023_v8  ;;  %v1034_v25 = vld [vmem:[%s1273_s3 + $0x18] sm:$0xff]   ;;  %v1035_v28 = vld [vmem:[%s1274_s2 + $0x8] sm:$0xff]   ;;  %v1020_v29 = vld [vmem:[%s1271_s0 + $0x30] sm:$0xff]  }
   0xb   :  { %883 = vmatpush3.bf16.msra.mxu0 %v1008_v2  ;;  %914 = vmatprep.subr.bf16.mxu1 %v1024_v10  ;;  %v1037_v30 = vld [vmem:[%s1274_s2 + $0x10] sm:$0xff]   ;;  %v1038_v31 = vld [vmem:[%s1273_s3 + $0x28] sm:$0xff]   ;;  %v1021_v33 = vld [vmem:[%s1271_s0 + $0x38] sm:$0xff]  }
   0xc   :  { %884 = vmatprep.subr.bf16.mxu0 %v1009_v3  ;;  %v1040_v32 = vld [vmem:[%s1273_s3 + $0x30] sm:$0xff]   ;;  %v1039_v34 = vld [vmem:[%s1274_s2 + $0x18] sm:$0xff]   ;;  %v1042_v36 = vld [vmem:[%s1274_s2 + $0x20] sm:$0xff]  }
   0xd   :  { %v1041_v35 = vld [vmem:[%s1273_s3 + $0x38] sm:$0xff]   ;;  %v1043_v37 = vld [vmem:[%s1274_s2 + $0x28] sm:$0xff]   ;;  %v1044_v38 = vld [vmem:[%s1274_s2 + $0x30] sm:$0xff]  }
   0xe   :  { %915 = vmatpush3.bf16.msra.mxu1 %v1024_v10  ;;  %v1045_v39 = vld [vmem:[%s1274_s2 + $0x38] sm:$0xff]  }
   0xf   :  { %885 = vmatpush3.bf16.msra.mxu0 %v1009_v3  ;;  %916 = vmatprep.subr.bf16.mxu1 %v1025_v12 }
  0x10   :  { %886 = vmatprep.subr.bf16.mxu0 %v1010_v5 }
  0x12   :  { %917 = vmatpush3.bf16.msra.mxu1 %v1025_v12 }
  0x13   :  { %887 = vmatpush3.bf16.msra.mxu0 %v1010_v5  ;;  %918 = vmatprep.subr.bf16.mxu1 %v1026_v13 }
  0x14   :  { %888 = vmatprep.subr.bf16.mxu0 %v1011_v6 }
  0x16   :  { %919 = vmatpush3.bf16.msra.mxu1 %v1026_v13 }
  0x17   :  { %889 = vmatpush3.bf16.msra.mxu0 %v1011_v6  ;;  %920 = vmatprep.subr.bf16.mxu1 %v1028_v18 }
  0x18   :  { %890 = vmatprep.subr.bf16.mxu0 %v1012_v9 }
  0x1a   :  { %921 = vmatpush3.bf16.msra.mxu1 %v1028_v18 }
  0x1b   :  { %891 = vmatpush3.bf16.msra.mxu0 %v1012_v9  ;;  %922 = vmatprep.subr.bf16.mxu1 %v1030_v20  ;;  %v1204_v9 = vld [vmem:[%s1275_s5] ss:$0 sm:$0xff] }
  0x1c   :  { %892 = vmatprep.subr.bf16.mxu0 %v1013_v11 }
  0x1e   :  { %923 = vmatpush3.bf16.msra.mxu1 %v1030_v20 }
  0x1f   :  { %893 = vmatpush3.bf16.msra.mxu0 %v1013_v11  ;;  %924 = vmatprep.subr.bf16.mxu1 %v1032_v24 }
  0x20   :  { %942 = vmatprep.subr.bf16.mxu0 %v1027_v15 }
  0x22   :  { %895 = vmatmul.mubr.bf16.vlgmr.msra.gmra.mrb[0].mxu0 %v1015_v16  ;;  %925 = vmatpush3.bf16.msra.mxu1 %v1032_v24 }
  0x23   :  { %898 = vmatprep.mubr.bf16.mxu0 %v1016_v17  ;;  %943 = vmatpush3.bf16.msra.mxu0 %v1027_v15 }
  0x24   :  { %944 = vmatprep.subr.bf16.mxu0 %v1029_v19  ;;  %974 = vmatprep.subr.bf16.mxu1 %v1027_v15 }
  0x25   :  { %927 = vmatmul.mubr.bf16.vlgmr.msra.gmra.mrb[0].mxu1 %v1035_v28 }
  0x26   :  { %982 = vmatpush3.bf16.msra.mxu1 %v1027_v15  ;;  %930 = vmatprep.mubr.bf16.mxu1 %v1037_v30 }
  0x27   :  { %945 = vmatpush3.bf16.msra.mxu0 %v1029_v19  ;;  %975 = vmatprep.subr.bf16.mxu1 %v1029_v19 }
  0x28   :  { %946 = vmatprep.subr.bf16.mxu0 %v1031_v21 }
  0x2a   :  { %899 = vmatmul.mubr.bf16.gmra.mrb[4].mxu0 %v1017_v22  ;;  %983 = vmatpush3.bf16.msra.mxu1 %v1029_v19 }
  0x2b   :  { %902 = vmatprep.mubr.bf16.mxu0 %v1018_v23  ;;  %947 = vmatpush3.bf16.msra.mxu0 %v1031_v21 }
  0x2c   :  { %948 = vmatprep.subr.bf16.mxu0 %v1034_v25  ;;  %976 = vmatprep.subr.bf16.mxu1 %v1031_v21 }
  0x2d   :  { %931 = vmatmul.mubr.bf16.gmra.mrb[4].mxu1 %v1039_v34 }
  0x2e   :  { %984 = vmatpush3.bf16.msra.mxu1 %v1031_v21  ;;  %934 = vmatprep.mubr.bf16.mxu1 %v1042_v36 }
  0x2f   :  { %949 = vmatpush3.bf16.msra.mxu0 %v1034_v25  ;;  %977 = vmatprep.subr.bf16.mxu1 %v1034_v25 }
  0x30   :  { %950 = vmatprep.subr.bf16.mxu0 %v1036_v26 }
  0x32   :  { %903 = vmatmul.mubr.bf16.gmra.mrb[8].mxu0 %v1019_v27  ;;  %985 = vmatpush3.bf16.msra.mxu1 %v1034_v25 }
  0x33   :  { %906 = vmatprep.mubr.bf16.mxu0 %v1020_v29  ;;  %951 = vmatpush3.bf16.msra.mxu0 %v1036_v26 }
  0x34   :  { %952 = vmatprep.subr.bf16.mxu0 %v1038_v31  ;;  %978 = vmatprep.subr.bf16.mxu1 %v1036_v26 }
  0x35   :  { %935 = vmatmul.mubr.bf16.gmra.mrb[8].mxu1 %v1043_v37 }
  0x36   :  { %986 = vmatpush3.bf16.msra.mxu1 %v1036_v26  ;;  %938 = vmatprep.mubr.bf16.mxu1 %v1044_v38 }
  0x37   :  { %953 = vmatpush3.bf16.msra.mxu0 %v1038_v31  ;;  %979 = vmatprep.subr.bf16.mxu1 %v1038_v31 }
  0x38   :  { %954 = vmatprep.subr.bf16.mxu0 %v1040_v32 }
  0x3a   :  { %907 = vmatmul.mubr.bf16.gmra.mrb[12].mxu0 %v1021_v33  ;;  %987 = vmatpush3.bf16.msra.mxu1 %v1038_v31 }
  0x3b   :  { %955 = vmatpush3.bf16.msra.mxu0 %v1040_v32  ;;  %980 = vmatprep.subr.bf16.mxu1 %v1040_v32 }
  0x3c   :  { %956 = vmatprep.subr.bf16.mxu0 %v1041_v35 }
  0x3d   :  { %939 = vmatmul.mubr.bf16.gmra.mrb[12].mxu1 %v1045_v39 }
  0x3e   :  { %988 = vmatpush3.bf16.msra.mxu1 %v1040_v32 }
  0x3f   :  { %981 = vmatprep.subr.bf16.mxu1 %v1041_v35  ;;  %957 = vmatpush3.bf16.msra.mxu0 %v1041_v35 }
  0x42   :  { %989 = vmatpush3.bf16.msra.mxu1 %v1041_v35 }
  0xf5   :  { %v896_v40 = vpop.f32.mrb[0].mxu0 }
  0xf6   :  { %v222_v41 = vpop.f32.mrb[1].mxu0 }
  0xf7   :  { %v897_v42 = vpop.f32.mrb[2].mxu0 }
  0xf8   :  { %v337_v43 = vpack.c.bf16 %v897_v42, %v896_v40  ;;  %v225_v44 = vpop.f32.mrb[3].mxu0  ;;  %v928_v53 = vpop.f32.mrb[0].mxu1 }
  0xf9   :  { %v336_v45 = vpack.c.bf16 %v225_v44, %v222_v41  ;;  %v522_v55 = vpop.f32.mrb[1].mxu1 }
  0xfa   :  { %v929_v57 = vpop.f32.mrb[2].mxu1 }
  0xfb   :  { %958 = vmatprep.mubr.bf16.mxu0 %v336_v45  ;;  %v525_v60 = vpop.f32.mrb[3].mxu1 }
  0xfc   :  { %959 = vmatmul.mubr.bf16.vlgmr.msra.gmra.mrb[16].mxu0 %v337_v43 }
  0xfd   :  { %v900_v46 = vpop.f32.mrb[4].mxu0 }
  0xfe   :  { %v238_v47 = vpop.f32.mrb[5].mxu0 }
  0xff   :  { %v901_v48 = vpop.f32.mrb[6].mxu0 }
 0x100   :  { %v339_v49 = vpack.c.bf16 %v901_v48, %v900_v46  ;;  %v241_v50 = vpop.f32.mrb[7].mxu0  ;;  %v932_v63 = vpop.f32.mrb[4].mxu1 }
 0x101   :  { %v338_v51 = vpack.c.bf16 %v241_v50, %v238_v47  ;;  %v538_v1 = vpop.f32.mrb[5].mxu1 }
 0x102   :  { %v933_v3 = vpop.f32.mrb[6].mxu1 }
 0x103   :  { %962 = vmatprep.mubr.bf16.mxu0 %v338_v51  ;;  %v541_v6 = vpop.f32.mrb[7].mxu1 }
 0x104   :  { %963 = vmatmul.mubr.bf16.gmra.mrb[20].mxu0 %v339_v49 }
 0x105   :  { %v904_v52 = vpop.f32.mrb[8].mxu0 }
 0x106   :  { %v254_v54 = vpop.f32.mrb[9].mxu0 }
 0x107   :  { %v905_v56 = vpop.f32.mrb[10].mxu0 }
 0x108   :  { %v341_v58 = vpack.c.bf16 %v905_v56, %v904_v52  ;;  %v257_v59 = vpop.f32.mrb[11].mxu0 }
 0x109   :  { %v340_v61 = vpack.c.bf16 %v257_v59, %v254_v54 }
 0x10b   :  { %966 = vmatprep.mubr.bf16.mxu1 %v340_v61 }
 0x10c   :  { %967 = vmatmul.mubr.bf16.vlgmr.msra.gmra.mrb[8].mxu1 %v341_v58 }
 0x10d   :  { %v908_v62 = vpop.f32.mrb[12].mxu0 }
 0x10e   :  { %v270_v0 = vpop.f32.mrb[13].mxu0 }
 0x10f   :  { %v909_v2 = vpop.f32.mrb[14].mxu0 }
 0x110   :  { %v343_v4 = vpack.c.bf16 %v909_v2, %v908_v62  ;;  %v273_v5 = vpop.f32.mrb[15].mxu0 }
 0x111   :  { %v342_v7 = vpack.c.bf16 %v273_v5, %v270_v0 }
 0x113   :  { %970 = vmatprep.mubr.bf16.mxu1 %v342_v7 }
 0x114   :  { %971 = vmatmul.mubr.bf16.gmra.mrb[12].mxu1 %v343_v4 }
 0x1cf   :  { %v960_v8 = vpop.f32.mrb[16].mxu0 }
 0x1d0   :  { %v676_v10 = vadd.f32 %v960_v8, %v928_v53  ;;  %v667_v11 = vpop.f32.mrb[17].mxu0 }
 0x1d1   :  { %v668_v12 = vadd.f32 %v667_v11, %v522_v55  ;;  %v961_v13 = vpop.f32.mrb[18].mxu0 }
 0x1d2   :  { %v739_v14 = vadd.f32 %v1204_v9, %v676_v10  ;;  %v679_v15 = vadd.f32 %v961_v13, %v929_v57  ;;  %v670_v16 = vpop.f32.mrb[19].mxu0 }
 0x1d3   :  { %v737_v17 = vadd.f32 %v1204_v9, %v668_v12  ;;  %v671_v18 = vadd.f32 %v670_v16, %v525_v60 }
 0x1d4   :  { %v755_v19 = vmax.f32 %v739_v14, 0.0  ;;  %v740_v20 = vadd.f32 %v1204_v9, %v679_v15 }
 0x1d5   :  { %v753_v21 = vmax.f32 %v737_v17, 0.0  ;;  %v738_v22 = vadd.f32 %v1204_v9, %v671_v18 }
 0x1d6   :  { %771 = vst [vmem:[%s1276_s6 + $0x10] sm:$0xff] %v755_v19  ;;  %v756_v23 = vmax.f32 %v740_v20, 0.0 }
 0x1d7   :  { %769 = vst [vmem:[%s1276_s6] sm:$0xff] %v753_v21  ;;  %v754_v24 = vmax.f32 %v738_v22, 0.0  ;;  %v964_v25 = vpop.f32.mrb[20].mxu0 }
 0x1d8   :  { %772 = vst [vmem:[%s1276_s6 + $0x18] sm:$0xff] %v756_v23  ;;  %v692_v26 = vadd.f32 %v964_v25, %v932_v63  ;;  %v683_v27 = vpop.f32.mrb[21].mxu0 }
 0x1d9   :  { %770 = vst [vmem:[%s1276_s6 + $0x8] sm:$0xff] %v754_v24  ;;  %v684_v28 = vadd.f32 %v683_v27, %v538_v1  ;;  %v965_v29 = vpop.f32.mrb[22].mxu0 }
 0x1da   :  { %v743_v30 = vadd.f32 %v1204_v9, %v692_v26  ;;  %v695_v31 = vadd.f32 %v965_v29, %v933_v3  ;;  %v686_v32 = vpop.f32.mrb[23].mxu0 }
 0x1db   :  { %v741_v33 = vadd.f32 %v1204_v9, %v684_v28  ;;  %v687_v34 = vadd.f32 %v686_v32, %v541_v6 }
 0x1dc   :  { %v759_v35 = vmax.f32 %v743_v30, 0.0  ;;  %v744_v36 = vadd.f32 %v1204_v9, %v695_v31 }
 0x1dd   :  { %v757_v37 = vmax.f32 %v741_v33, 0.0  ;;  %v742_v38 = vadd.f32 %v1204_v9, %v687_v34 }
 0x1de   :  { %775 = vst [vmem:[%s1276_s6 + $0x30] sm:$0xff] %v759_v35  ;;  %v760_v39 = vmax.f32 %v744_v36, 0.0 }
 0x1df   :  { %773 = vst [vmem:[%s1276_s6 + $0x20] sm:$0xff] %v757_v37  ;;  %v758_v40 = vmax.f32 %v742_v38, 0.0  ;;  %v968_v41 = vpop.f32.mrb[8].mxu1 }
 0x1e0   :  { %776 = vst [vmem:[%s1276_s6 + $0x38] sm:$0xff] %v760_v39  ;;  %v747_v42 = vadd.f32 %v968_v41, %v1204_v9  ;;  %v699_v43 = vpop.f32.mrb[9].mxu1 }
 0x1e1   :  { %774 = vst [vmem:[%s1276_s6 + $0x28] sm:$0xff] %v758_v40  ;;  %v745_v44 = vadd.f32 %v1204_v9, %v699_v43  ;;  %v969_v45 = vpop.f32.mrb[10].mxu1 }
 0x1e2   :  { %v763_v46 = vmax.f32 %v747_v42, 0.0  ;;  %v748_v47 = vadd.f32 %v969_v45, %v1204_v9  ;;  %v702_v48 = vpop.f32.mrb[11].mxu1 }
 0x1e3   :  { %v761_v49 = vmax.f32 %v745_v44, 0.0  ;;  %v746_v50 = vadd.f32 %v1204_v9, %v702_v48 }
 0x1e4   :  { %779 = vst [vmem:[%s1276_s6 + $0x50] sm:$0xff] %v763_v46  ;;  %v764_v51 = vmax.f32 %v748_v47, 0.0 }
 0x1e5   :  { %777 = vst [vmem:[%s1276_s6 + $0x40] sm:$0xff] %v761_v49  ;;  %v762_v52 = vmax.f32 %v746_v50, 0.0 }
 0x1e6   :  { %780 = vst [vmem:[%s1276_s6 + $0x58] sm:$0xff] %v764_v51 }
 0x1e7   :  { %778 = vst [vmem:[%s1276_s6 + $0x48] sm:$0xff] %v762_v52  ;;  %v972_v53 = vpop.f32.mrb[12].mxu1 }
 0x1e8   :  { %v751_v54 = vadd.f32 %v972_v53, %v1204_v9  ;;  %v715_v55 = vpop.f32.mrb[13].mxu1 }
 0x1e9   :  { %v749_v56 = vadd.f32 %v1204_v9, %v715_v55  ;;  %v973_v57 = vpop.f32.mrb[14].mxu1 }
 0x1ea   :  { %v767_v58 = vmax.f32 %v751_v54, 0.0  ;;  %v752_v59 = vadd.f32 %v973_v57, %v1204_v9  ;;  %v718_v60 = vpop.f32.mrb[15].mxu1 }
 0x1eb   :  { %v765_v61 = vmax.f32 %v749_v56, 0.0  ;;  %v750_v62 = vadd.f32 %v1204_v9, %v718_v60 }
 0x1ec   :  { %783 = vst [vmem:[%s1276_s6 + $0x70] sm:$0xff] %v767_v58  ;;  %v768_v63 = vmax.f32 %v752_v59, 0.0 }
 0x1ed   :  { %781 = vst [vmem:[%s1276_s6 + $0x60] sm:$0xff] %v765_v61  ;;  %v766_v0 = vmax.f32 %v750_v62, 0.0 }
 0x1ee   :  { %784 = vst [vmem:[%s1276_s6 + $0x78] sm:$0xff] %v768_v63 }
 0x1ef   :  { %782 = vst [vmem:[%s1276_s6 + $0x68] sm:$0xff] %v766_v0 }

// kernel: graphsage_forward.2
= control target key start
LH: loop header
LB: loop body
LE: loop exit
PB: predicated region body
PF: predicated region fallthrough
CT: control target
= control target key end

     0   :  { %s1389_s1 = inlined_call_operand.vmem [shape: bf16[128,128], index: 1, kind: input, shape index: {}, may-alias: {1,2}]   ;;  %s1390_s0 = inlined_call_operand.vmem [shape: bf16[128,128], index: 0, kind: input, shape index: {}]   ;;  %s1391_s4 = inlined_call_operand.vmem [shape: bf16[128,128], index: 4, kind: input, shape index: {}]   ;;  %s1392_s3 = inlined_call_operand.vmem [shape: bf16[128,128], index: 3, kind: input, shape index: {}]   ;;  %s1393_s2 = inlined_call_operand.vmem [shape: bf16[128,128], index: 2, kind: input, shape index: {}, may-alias: {1,2}]   ;;  %s1394_s5 = inlined_call_operand.vmem [shape: f32[1,128], index: 5, kind: input, shape index: {}]   ;;  %s1395_s6 = inlined_call_operand.vmem [shape: bf16[128,128], index: 6, kind: output, shape index: {}]  }
   0x1   :  { %v1149_v0 = vld [vmem:[%s1389_s1] sm:$0xff]   ;;  %v1150_v1 = vld [vmem:[%s1389_s1 + $0x8] sm:$0xff]   ;;  %v1151_v2 = vld [vmem:[%s1389_s1 + $0x10] sm:$0xff]  }
   0x2   :  { %1021 = vmatprep.subr.bf16.mxu0 %v1149_v0  ;;  %v1152_v3 = vld [vmem:[%s1389_s1 + $0x18] sm:$0xff]   ;;  %v1157_v4 = vld [vmem:[%s1390_s0] sm:$0xff]   ;;  %v1154_v6 = vld [vmem:[%s1389_s1 + $0x28] sm:$0xff]  }
   0x3   :  { %1022 = vmatpush3.bf16.msra.mxu0 %v1149_v0  ;;  %1037 = vmatprep.mubr.bf16.mxu0 %v1157_v4  ;;  %v1153_v5 = vld [vmem:[%s1389_s1 + $0x20] sm:$0xff]   ;;  %v1166_v8 = vld [vmem:[%s1391_s4 + $0x8] sm:$0xff]   ;;  %v1155_v9 = vld [vmem:[%s1389_s1 + $0x30] sm:$0xff]  }
   0x4   :  { %1023 = vmatprep.subr.bf16.mxu0 %v1150_v1  ;;  %v1165_v7 = vld [vmem:[%s1391_s4] sm:$0xff]   ;;  %v1167_v10 = vld [vmem:[%s1391_s4 + $0x10] sm:$0xff]   ;;  %v1156_v11 = vld [vmem:[%s1389_s1 + $0x38] sm:$0xff]  }
   0x5   :  { %1053 = vmatprep.subr.bf16.mxu1 %v1165_v7  ;;  %v1168_v12 = vld [vmem:[%s1391_s4 + $0x18] sm:$0xff]   ;;  %v1169_v13 = vld [vmem:[%s1391_s4 + $0x20] sm:$0xff]   ;;  %v1158_v16 = vld [vmem:[%s1390_s0 + $0x8] sm:$0xff]  }
   0x6   :  { %1054 = vmatpush3.bf16.msra.mxu1 %v1165_v7  ;;  %v1176_v14 = vld [vmem:[%s1393_s2] sm:$0xff]   ;;  %v1159_v17 = vld [vmem:[%s1390_s0 + $0x10] sm:$0xff]   ;;  %v1171_v18 = vld [vmem:[%s1391_s4 + $0x28] sm:$0xff]  }
   0x7   :  { %1024 = vmatpush3.bf16.msra.mxu0 %v1150_v1  ;;  %1055 = vmatprep.subr.bf16.mxu1 %v1166_v8  ;;  %v1170_v15 = vld [vmem:[%s1392_s3] sm:$0xff]   ;;  %v1172_v19 = vld [vmem:[%s1392_s3 + $0x8] sm:$0xff]   ;;  %v1173_v20 = vld [vmem:[%s1391_s4 + $0x30] sm:$0xff]  }
   0x8   :  { %1025 = vmatprep.subr.bf16.mxu0 %v1151_v2  ;;  %1069 = vmatprep.mubr.bf16.mxu1 %v1176_v14  ;;  %v1174_v21 = vld [vmem:[%s1392_s3 + $0x10] sm:$0xff]   ;;  %v1160_v22 = vld [vmem:[%s1390_s0 + $0x18] sm:$0xff]   ;;  %v1161_v23 = vld [vmem:[%s1390_s0 + $0x20] sm:$0xff]  }
   0x9   :  { %v1175_v24 = vld [vmem:[%s1391_s4 + $0x38] sm:$0xff]   ;;  %v1179_v26 = vld [vmem:[%s1392_s3 + $0x20] sm:$0xff]   ;;  %v1162_v27 = vld [vmem:[%s1390_s0 + $0x28] sm:$0xff]  }
   0xa   :  { %1056 = vmatpush3.bf16.msra.mxu1 %v1166_v8  ;;  %v1177_v25 = vld [vmem:[%s1392_s3 + $0x18] sm:$0xff]   ;;  %v1178_v28 = vld [vmem:[%s1393_s2 + $0x8] sm:$0xff]   ;;  %v1163_v29 = vld [vmem:[%s1390_s0 + $0x30] sm:$0xff]  }
   0xb   :  { %1026 = vmatpush3.bf16.msra.mxu0 %v1151_v2  ;;  %1057 = vmatprep.subr.bf16.mxu1 %v1167_v10  ;;  %v1180_v30 = vld [vmem:[%s1393_s2 + $0x10] sm:$0xff]   ;;  %v1181_v31 = vld [vmem:[%s1392_s3 + $0x28] sm:$0xff]   ;;  %v1164_v33 = vld [vmem:[%s1390_s0 + $0x38] sm:$0xff]  }
   0xc   :  { %1027 = vmatprep.subr.bf16.mxu0 %v1152_v3  ;;  %v1183_v32 = vld [vmem:[%s1392_s3 + $0x30] sm:$0xff]   ;;  %v1182_v34 = vld [vmem:[%s1393_s2 + $0x18] sm:$0xff]   ;;  %v1185_v36 = vld [vmem:[%s1393_s2 + $0x20] sm:$0xff]  }
   0xd   :  { %v1184_v35 = vld [vmem:[%s1392_s3 + $0x38] sm:$0xff]   ;;  %v1186_v37 = vld [vmem:[%s1393_s2 + $0x28] sm:$0xff]   ;;  %v1187_v38 = vld [vmem:[%s1393_s2 + $0x30] sm:$0xff]  }
   0xe   :  { %1058 = vmatpush3.bf16.msra.mxu1 %v1167_v10  ;;  %v1188_v39 = vld [vmem:[%s1393_s2 + $0x38] sm:$0xff]  }
   0xf   :  { %1028 = vmatpush3.bf16.msra.mxu0 %v1152_v3  ;;  %1059 = vmatprep.subr.bf16.mxu1 %v1168_v12 }
  0x10   :  { %1029 = vmatprep.subr.bf16.mxu0 %v1153_v5 }
  0x12   :  { %1060 = vmatpush3.bf16.msra.mxu1 %v1168_v12 }
  0x13   :  { %1030 = vmatpush3.bf16.msra.mxu0 %v1153_v5  ;;  %1061 = vmatprep.subr.bf16.mxu1 %v1169_v13 }
  0x14   :  { %1031 = vmatprep.subr.bf16.mxu0 %v1154_v6 }
  0x16   :  { %1062 = vmatpush3.bf16.msra.mxu1 %v1169_v13 }
  0x17   :  { %1032 = vmatpush3.bf16.msra.mxu0 %v1154_v6  ;;  %1063 = vmatprep.subr.bf16.mxu1 %v1171_v18 }
  0x18   :  { %1033 = vmatprep.subr.bf16.mxu0 %v1155_v9 }
  0x1a   :  { %1064 = vmatpush3.bf16.msra.mxu1 %v1171_v18 }
  0x1b   :  { %1034 = vmatpush3.bf16.msra.mxu0 %v1155_v9  ;;  %1065 = vmatprep.subr.bf16.mxu1 %v1173_v20  ;;  %v1347_v9 = vld [vmem:[%s1394_s5] ss:$0 sm:$0xff] }
  0x1c   :  { %1035 = vmatprep.subr.bf16.mxu0 %v1156_v11 }
  0x1e   :  { %1066 = vmatpush3.bf16.msra.mxu1 %v1173_v20 }
  0x1f   :  { %1036 = vmatpush3.bf16.msra.mxu0 %v1156_v11  ;;  %1067 = vmatprep.subr.bf16.mxu1 %v1175_v24 }
  0x20   :  { %1085 = vmatprep.subr.bf16.mxu0 %v1170_v15 }
  0x22   :  { %1038 = vmatmul.mubr.bf16.vlgmr.msra.gmra.mrb[0].mxu0 %v1158_v16  ;;  %1068 = vmatpush3.bf16.msra.mxu1 %v1175_v24 }
  0x23   :  { %1041 = vmatprep.mubr.bf16.mxu0 %v1159_v17  ;;  %1086 = vmatpush3.bf16.msra.mxu0 %v1170_v15 }
  0x24   :  { %1087 = vmatprep.subr.bf16.mxu0 %v1172_v19  ;;  %1117 = vmatprep.subr.bf16.mxu1 %v1170_v15 }
  0x25   :  { %1070 = vmatmul.mubr.bf16.vlgmr.msra.gmra.mrb[0].mxu1 %v1178_v28 }
  0x26   :  { %1125 = vmatpush3.bf16.msra.mxu1 %v1170_v15  ;;  %1073 = vmatprep.mubr.bf16.mxu1 %v1180_v30 }
  0x27   :  { %1088 = vmatpush3.bf16.msra.mxu0 %v1172_v19  ;;  %1118 = vmatprep.subr.bf16.mxu1 %v1172_v19 }
  0x28   :  { %1089 = vmatprep.subr.bf16.mxu0 %v1174_v21 }
  0x2a   :  { %1042 = vmatmul.mubr.bf16.gmra.mrb[4].mxu0 %v1160_v22  ;;  %1126 = vmatpush3.bf16.msra.mxu1 %v1172_v19 }
  0x2b   :  { %1045 = vmatprep.mubr.bf16.mxu0 %v1161_v23  ;;  %1090 = vmatpush3.bf16.msra.mxu0 %v1174_v21 }
  0x2c   :  { %1091 = vmatprep.subr.bf16.mxu0 %v1177_v25  ;;  %1119 = vmatprep.subr.bf16.mxu1 %v1174_v21 }
  0x2d   :  { %1074 = vmatmul.mubr.bf16.gmra.mrb[4].mxu1 %v1182_v34 }
  0x2e   :  { %1127 = vmatpush3.bf16.msra.mxu1 %v1174_v21  ;;  %1077 = vmatprep.mubr.bf16.mxu1 %v1185_v36 }
  0x2f   :  { %1092 = vmatpush3.bf16.msra.mxu0 %v1177_v25  ;;  %1120 = vmatprep.subr.bf16.mxu1 %v1177_v25 }
  0x30   :  { %1093 = vmatprep.subr.bf16.mxu0 %v1179_v26 }
  0x32   :  { %1046 = vmatmul.mubr.bf16.gmra.mrb[8].mxu0 %v1162_v27  ;;  %1128 = vmatpush3.bf16.msra.mxu1 %v1177_v25 }
  0x33   :  { %1049 = vmatprep.mubr.bf16.mxu0 %v1163_v29  ;;  %1094 = vmatpush3.bf16.msra.mxu0 %v1179_v26 }
  0x34   :  { %1095 = vmatprep.subr.bf16.mxu0 %v1181_v31  ;;  %1121 = vmatprep.subr.bf16.mxu1 %v1179_v26 }
  0x35   :  { %1078 = vmatmul.mubr.bf16.gmra.mrb[8].mxu1 %v1186_v37 }
  0x36   :  { %1129 = vmatpush3.bf16.msra.mxu1 %v1179_v26  ;;  %1081 = vmatprep.mubr.bf16.mxu1 %v1187_v38 }
  0x37   :  { %1096 = vmatpush3.bf16.msra.mxu0 %v1181_v31  ;;  %1122 = vmatprep.subr.bf16.mxu1 %v1181_v31 }
  0x38   :  { %1097 = vmatprep.subr.bf16.mxu0 %v1183_v32 }
  0x3a   :  { %1050 = vmatmul.mubr.bf16.gmra.mrb[12].mxu0 %v1164_v33  ;;  %1130 = vmatpush3.bf16.msra.mxu1 %v1181_v31 }
  0x3b   :  { %1098 = vmatpush3.bf16.msra.mxu0 %v1183_v32  ;;  %1123 = vmatprep.subr.bf16.mxu1 %v1183_v32 }
  0x3c   :  { %1099 = vmatprep.subr.bf16.mxu0 %v1184_v35 }
  0x3d   :  { %1082 = vmatmul.mubr.bf16.gmra.mrb[12].mxu1 %v1188_v39 }
  0x3e   :  { %1131 = vmatpush3.bf16.msra.mxu1 %v1183_v32 }
  0x3f   :  { %1124 = vmatprep.subr.bf16.mxu1 %v1184_v35  ;;  %1100 = vmatpush3.bf16.msra.mxu0 %v1184_v35 }
  0x42   :  { %1132 = vmatpush3.bf16.msra.mxu1 %v1184_v35 }
  0xf5   :  { %v1039_v40 = vpop.f32.mrb[0].mxu0 }
  0xf6   :  { %v222_v41 = vpop.f32.mrb[1].mxu0 }
  0xf7   :  { %v1040_v42 = vpop.f32.mrb[2].mxu0 }
  0xf8   :  { %v337_v43 = vpack.c.bf16 %v1040_v42, %v1039_v40  ;;  %v225_v44 = vpop.f32.mrb[3].mxu0  ;;  %v1071_v53 = vpop.f32.mrb[0].mxu1 }
  0xf9   :  { %v336_v45 = vpack.c.bf16 %v225_v44, %v222_v41  ;;  %v522_v55 = vpop.f32.mrb[1].mxu1 }
  0xfa   :  { %v1072_v57 = vpop.f32.mrb[2].mxu1 }
  0xfb   :  { %1101 = vmatprep.mubr.bf16.mxu0 %v336_v45  ;;  %v525_v60 = vpop.f32.mrb[3].mxu1 }
  0xfc   :  { %1102 = vmatmul.mubr.bf16.vlgmr.msra.gmra.mrb[16].mxu0 %v337_v43 }
  0xfd   :  { %v1043_v46 = vpop.f32.mrb[4].mxu0 }
  0xfe   :  { %v238_v47 = vpop.f32.mrb[5].mxu0 }
  0xff   :  { %v1044_v48 = vpop.f32.mrb[6].mxu0 }
 0x100   :  { %v339_v49 = vpack.c.bf16 %v1044_v48, %v1043_v46  ;;  %v241_v50 = vpop.f32.mrb[7].mxu0  ;;  %v1075_v63 = vpop.f32.mrb[4].mxu1 }
 0x101   :  { %v338_v51 = vpack.c.bf16 %v241_v50, %v238_v47  ;;  %v538_v1 = vpop.f32.mrb[5].mxu1 }
 0x102   :  { %v1076_v3 = vpop.f32.mrb[6].mxu1 }
 0x103   :  { %1105 = vmatprep.mubr.bf16.mxu0 %v338_v51  ;;  %v541_v6 = vpop.f32.mrb[7].mxu1 }
 0x104   :  { %1106 = vmatmul.mubr.bf16.gmra.mrb[20].mxu0 %v339_v49 }
 0x105   :  { %v1047_v52 = vpop.f32.mrb[8].mxu0 }
 0x106   :  { %v254_v54 = vpop.f32.mrb[9].mxu0 }
 0x107   :  { %v1048_v56 = vpop.f32.mrb[10].mxu0 }
 0x108   :  { %v341_v58 = vpack.c.bf16 %v1048_v56, %v1047_v52  ;;  %v257_v59 = vpop.f32.mrb[11].mxu0 }
 0x109   :  { %v340_v61 = vpack.c.bf16 %v257_v59, %v254_v54 }
 0x10b   :  { %1109 = vmatprep.mubr.bf16.mxu1 %v340_v61 }
 0x10c   :  { %1110 = vmatmul.mubr.bf16.vlgmr.msra.gmra.mrb[8].mxu1 %v341_v58 }
 0x10d   :  { %v1051_v62 = vpop.f32.mrb[12].mxu0 }
 0x10e   :  { %v270_v0 = vpop.f32.mrb[13].mxu0 }
 0x10f   :  { %v1052_v2 = vpop.f32.mrb[14].mxu0 }
 0x110   :  { %v343_v4 = vpack.c.bf16 %v1052_v2, %v1051_v62  ;;  %v273_v5 = vpop.f32.mrb[15].mxu0 }
 0x111   :  { %v342_v7 = vpack.c.bf16 %v273_v5, %v270_v0 }
 0x113   :  { %1113 = vmatprep.mubr.bf16.mxu1 %v342_v7 }
 0x114   :  { %1114 = vmatmul.mubr.bf16.gmra.mrb[12].mxu1 %v343_v4 }
 0x1cf   :  { %v1103_v8 = vpop.f32.mrb[16].mxu0 }
 0x1d0   :  { %v676_v10 = vadd.f32 %v1103_v8, %v1071_v53  ;;  %v667_v11 = vpop.f32.mrb[17].mxu0 }
 0x1d1   :  { %v668_v12 = vadd.f32 %v667_v11, %v522_v55  ;;  %v1104_v13 = vpop.f32.mrb[18].mxu0 }
 0x1d2   :  { %v739_v14 = vadd.f32 %v1347_v9, %v676_v10  ;;  %v679_v15 = vadd.f32 %v1104_v13, %v1072_v57  ;;  %v670_v16 = vpop.f32.mrb[19].mxu0 }
 0x1d3   :  { %v737_v17 = vadd.f32 %v1347_v9, %v668_v12  ;;  %v671_v18 = vadd.f32 %v670_v16, %v525_v60 }
 0x1d4   :  { %v740_v19 = vadd.f32 %v1347_v9, %v679_v15  ;;  %v755_v21 = vmax.f32 %v739_v14, 0.0 }
 0x1d5   :  { %v738_v20 = vadd.f32 %v1347_v9, %v671_v18  ;;  %v753_v23 = vmax.f32 %v737_v17, 0.0 }
 0x1d6   :  { %v756_v22 = vmax.f32 %v740_v19, 0.0 }
 0x1d7   :  { %v754_v24 = vmax.f32 %v738_v20, 0.0  ;;  %v1107_v25 = vpop.f32.mrb[20].mxu0 }
 0x1d8   :  { %v934_v26 = vpack.c.bf16 %v756_v22, %v755_v21  ;;  %v692_v27 = vadd.f32 %v1107_v25, %v1075_v63  ;;  %v683_v28 = vpop.f32.mrb[21].mxu0 }
 0x1d9   :  { %v929_v29 = vpack.c.bf16 %v754_v24, %v753_v23  ;;  %v684_v30 = vadd.f32 %v683_v28, %v538_v1  ;;  %v1108_v31 = vpop.f32.mrb[22].mxu0 }
 0x1da   :  { %966 = vst [vmem:[%s1395_s6 + $0x8] sm:$0xff] %v934_v26   ;;  %v743_v32 = vadd.f32 %v1347_v9, %v692_v27  ;;  %v695_v33 = vadd.f32 %v1108_v31, %v1076_v3  ;;  %v686_v34 = vpop.f32.mrb[23].mxu0 }
 0x1db   :  { %930 = vst [vmem:[%s1395_s6] sm:$0xff] %v929_v29   ;;  %v741_v35 = vadd.f32 %v1347_v9, %v684_v30  ;;  %v687_v36 = vadd.f32 %v686_v34, %v541_v6 }
 0x1dc   :  { %v744_v37 = vadd.f32 %v1347_v9, %v695_v33  ;;  %v759_v39 = vmax.f32 %v743_v32, 0.0 }
 0x1dd   :  { %v742_v38 = vadd.f32 %v1347_v9, %v687_v36  ;;  %v757_v41 = vmax.f32 %v741_v35, 0.0 }
 0x1de   :  { %v760_v40 = vmax.f32 %v744_v37, 0.0 }
 0x1df   :  { %v758_v42 = vmax.f32 %v742_v38, 0.0  ;;  %v1111_v43 = vpop.f32.mrb[8].mxu1 }
 0x1e0   :  { %v944_v44 = vpack.c.bf16 %v760_v40, %v759_v39  ;;  %v747_v45 = vadd.f32 %v1111_v43, %v1347_v9  ;;  %v699_v46 = vpop.f32.mrb[9].mxu1 }
 0x1e1   :  { %v939_v47 = vpack.c.bf16 %v758_v42, %v757_v41  ;;  %v745_v48 = vadd.f32 %v1347_v9, %v699_v46  ;;  %v1112_v49 = vpop.f32.mrb[10].mxu1 }
 0x1e2   :  { %968 = vst [vmem:[%s1395_s6 + $0x18] sm:$0xff] %v944_v44   ;;  %v748_v50 = vadd.f32 %v1112_v49, %v1347_v9  ;;  %v702_v51 = vpop.f32.mrb[11].mxu1  ;;  %v763_v53 = vmax.f32 %v747_v45, 0.0 }
 0x1e3   :  { %967 = vst [vmem:[%s1395_s6 + $0x10] sm:$0xff] %v939_v47   ;;  %v746_v52 = vadd.f32 %v1347_v9, %v702_v51  ;;  %v761_v55 = vmax.f32 %v745_v48, 0.0 }
 0x1e4   :  { %v764_v54 = vmax.f32 %v748_v50, 0.0 }
 0x1e5   :  { %v762_v56 = vmax.f32 %v746_v52, 0.0 }
 0x1e6   :  { %v954_v57 = vpack.c.bf16 %v764_v54, %v763_v53 }
 0x1e7   :  { %v949_v58 = vpack.c.bf16 %v762_v56, %v761_v55  ;;  %v1115_v59 = vpop.f32.mrb[12].mxu1 }
 0x1e8   :  { %970 = vst [vmem:[%s1395_s6 + $0x28] sm:$0xff] %v954_v57   ;;  %v751_v60 = vadd.f32 %v1115_v59, %v1347_v9  ;;  %v715_v61 = vpop.f32.mrb[13].mxu1 }
 0x1e9   :  { %969 = vst [vmem:[%s1395_s6 + $0x20] sm:$0xff] %v949_v58   ;;  %v749_v62 = vadd.f32 %v1347_v9, %v715_v61  ;;  %v1116_v63 = vpop.f32.mrb[14].mxu1 }
 0x1ea   :  { %v752_v0 = vadd.f32 %v1116_v63, %v1347_v9  ;;  %v718_v1 = vpop.f32.mrb[15].mxu1  ;;  %v767_v3 = vmax.f32 %v751_v60, 0.0 }
 0x1eb   :  { %v750_v2 = vadd.f32 %v1347_v9, %v718_v1  ;;  %v765_v5 = vmax.f32 %v749_v62, 0.0 }
 0x1ec   :  { %v768_v4 = vmax.f32 %v752_v0, 0.0 }
 0x1ed   :  { %v766_v6 = vmax.f32 %v750_v2, 0.0 }
 0x1ee   :  { %v964_v7 = vpack.c.bf16 %v768_v4, %v767_v3 }
 0x1ef   :  { %v959_v8 = vpack.c.bf16 %v766_v6, %v765_v5 }
 0x1f0   :  { %972 = vst [vmem:[%s1395_s6 + $0x38] sm:$0xff] %v964_v7  }
 0x1f1   :  { %971 = vst [vmem:[%s1395_s6 + $0x30] sm:$0xff] %v959_v8  }

</bundles_post_ra>
